<compile_context>
chip_gen: v7x
topology: tpu7x:2x2x1
jax: 0.10.0
libtpu: 0.0.40
codegen_flags: <defaults>
</compile_context>

<pallas_src>
import functools

import jax
import jax.numpy as jnp
import numpy as np
from jax import lax
from jax.experimental import pallas as pl
from jax.experimental.pallas import tpu as pltpu


def _round_up(x, m):
    return (x + m - 1) // m * m


def _pick_tile(padded_dim, candidates):
    for c in candidates:
        if padded_dim % c == 0:
            return c
    return padded_dim


def _vmem_limit_bytes(required_bytes):
    """Generation-aware scoped-VMEM limit: ~50% of physical, never below need."""
    try:
        cap = int(pltpu.get_tpu_info().vmem_capacity_bytes)
    except Exception:                       # fallback if the query is unavailable
        cap = 64 * 1024 * 1024
    return int(min(cap, max(cap // 2, required_bytes)))


# ----------------------------------------------------------------------------
# Linear branch: y = x @ W.T + b
# ----------------------------------------------------------------------------
def _linear_kernel(x_ref, w_ref, b_ref, o_ref, acc_ref):
    """One (tm, tn) output tile; K (grid axis 2) is the reduction axis.

    x_ref: [tm, tk]   w_ref: [tk, tn] (canonical RHS layout)   b_ref: [1, tn]
    o_ref: [tm, tn]   acc_ref: f32 VMEM scratch [tm, tn]
    """
    @pl.when(pl.program_id(2) == 0)
    def _init():
        # Fold the bias add into the reduction: init the accumulator with the
        # broadcast bias instead of zeros + a separate epilogue add.
        acc_ref[...] = jnp.broadcast_to(b_ref[...].astype(jnp.float32),
                                        acc_ref.shape)

    acc_ref[...] += jnp.dot(x_ref[...], w_ref[...],
                            preferred_element_type=jnp.float32)

    @pl.when(pl.program_id(2) == pl.num_programs(2) - 1)
    def _finalize():
        o_ref[...] = acc_ref[...].astype(o_ref.dtype)


def _choose_tm(m):
    if m >= 1024:
        return 256
    if m >= 128:
        return 128
    # Small M: a single sublane-packed tile (16 keeps bf16 (16,128) granularity).
    return _round_up(m, 16)


def splitbias_linear(x, w, b, *, use_bf16_mxu=False):
    """SplitBias(nn.Linear): x:[M,K], w:[N,K] (PyTorch layout), b:[N]."""
    M, K = x.shape
    N, Kw = w.shape
    assert K == Kw

    out_dtype = x.dtype
    # One-time transpose to the canonical MXU RHS layout [K, N] (static under
    # jit), so the kernel never relayouts W tiles on the XLU.
    wt = w.T
    if use_bf16_mxu:
        x = x.astype(jnp.bfloat16)
        wt = wt.astype(jnp.bfloat16)

    tm = _choose_tm(M)
    Mp = _round_up(M, tm)
    Kp = _round_up(K, 128)
    Np = _round_up(N, 128)                              # lane-dense output cols
    tk = _pick_tile(Kp, (512, 256, 128))
    tn = _pick_tile(Np, (512, 256, 128))

    xp = jnp.pad(x, ((0, Mp - M), (0, Kp - K)))         # zero K-pad: no effect
    wp = jnp.pad(wt, ((0, Kp - K), (0, Np - N)))
    bp = jnp.pad(b, (0, Np - N)).reshape(1, Np)         # bias stays f32

    grid = (Mp // tm, Np // tn, Kp // tk)
    in_bytes = jnp.dtype(xp.dtype).itemsize
    out_bytes = jnp.dtype(out_dtype).itemsize
    cost = pl.CostEstimate(
        flops=2 * Mp * Np * Kp, transcendentals=0,
        bytes_accessed=(Mp * Kp + Kp * Np) * in_bytes + Mp * Np * out_bytes)
    required = (2 * (tm * tk + tk * tn) * in_bytes      # double-buffered inputs
                + 2 * tn * 4                            # bias
                + 2 * tm * tn * out_bytes               # output blocks
                + tm * tn * 4                           # f32 accumulator
                + (1 << 21))                            # compiler headroom

    out = pl.pallas_call(
        _linear_kernel,
        out_shape=jax.ShapeDtypeStruct((Mp, Np), out_dtype),
        grid=grid,
        in_specs=[
            pl.BlockSpec((tm, tk), lambda i, j, k: (i, k)),
            pl.BlockSpec((tk, tn), lambda i, j, k: (k, j)),
            pl.BlockSpec((1, tn), lambda i, j, k: (0, j)),
        ],
        out_specs=pl.BlockSpec((tm, tn), lambda i, j, k: (i, j)),
        scratch_shapes=[pltpu.VMEM((tm, tn), jnp.float32)],
        compiler_params=pltpu.CompilerParams(
            dimension_semantics=("parallel", "parallel", "arbitrary"),
            vmem_limit_bytes=_vmem_limit_bytes(required)),
        cost_estimate=cost,
    )(xp, wp, bp)
    return out[:M, :N]


# ----------------------------------------------------------------------------
# Conv2d branch: y = conv2d(x, W, stride=1) + b.view(1, C, 1, 1)
# ----------------------------------------------------------------------------
def _conv_kernel(x_hbm, w_ref, b_ref, o_ref, xwin, sem, *, KH, KW):
    """One (batch, Cout tile, output-row block) step.

    x_hbm : [B, Hp_pad, Wp, Cin]   padded NHWC input left in HBM (pl.ANY)
    w_ref : [KH*KW, Cin, tcout]    taps in (kh, kw) order, canonical [Cin, N]
    b_ref : [1, tcout]
    o_ref : [tho, Wo, tcout]       lane-dense output row block
    xwin  : [2, tho+KH-1, Wp, Cin] manually double-buffered halo window
    sem   : DMA semaphores, shape (2,)
    """
    b = pl.program_id(0)
    r = pl.program_id(2)
    nr = pl.num_programs(2)
    tho, Wo, tcout = o_ref.shape
    win_h = xwin.shape[1]
    Cin = xwin.shape[3]
    slot = r % 2

    def fetch(row_block, dst_slot):
        pltpu.make_async_copy(
            x_hbm.at[b, pl.ds(row_block * tho, win_h)],
            xwin.at[dst_slot], sem.at[dst_slot]).start()

    # Prime the pipeline at the start of each row sweep.  The prefetch below
    # only spans consecutive steps of the (sequential, "arbitrary") row axis,
    # so it stays correct when the outer axes are megacore-sharded.
    @pl.when(r == 0)
    def _prime():
        fetch(0, 0)

    # Wait for this row block's halo window (prefetched by the previous step
    # or by the prime above).
    pltpu.make_async_copy(x_hbm.at[0, pl.ds(0, win_h)],
                          xwin.at[slot], sem.at[slot]).wait()

    # Prefetch the next row block's window into the other slot.
    @pl.when(r + 1 < nr)
    def _prefetch():
        fetch(r + 1, 1 - slot)

    win = xwin.at[slot]
    bias = b_ref[...].astype(jnp.float32)               # [1, tcout]
    acc = None
    # Static unroll over taps; the accumulator is a value (vreg / compiler
    # managed), not a VMEM scratch, so there is no per-tap full-tile RMW.
    # TODO(synk): for Cin % 128 == 0, build an im2col tile and fold all taps
    # into a single K = KH*KW*Cin contraction; also tile Wo for very wide rows.
    for kh in range(KH):
        for kw in range(KW):
            patch = win[kh:kh + tho, kw:kw + Wo, :].reshape(tho * Wo, Cin)
            contrib = jnp.dot(patch, w_ref[kh * KW + kw],
                              preferred_element_type=jnp.float32)
            acc = contrib + bias if acc is None else acc + contrib
    o_ref[...] = acc.reshape(tho, Wo, tcout).astype(o_ref.dtype)


def _choose_tho(Ho, Wo):
    # Bound the per-step f32 accumulator (~tho*Wo rows) so it mostly lives in
    # vregs while keeping the MXU LHS reasonably tall.
    tho = max(1, min(Ho, 256 // max(Wo, 1)))
    if tho >= 8:
        tho = (tho // 8) * 8
    return tho


def splitbias_conv2d(x_nchw, w_oihw, b, *, padding=1, stride=1, dilation=1):
    """SplitBias(nn.Conv2d): NCHW in / NCHW out.  stride=1, dilation=1 only."""
    assert stride == 1 and dilation == 1, "only stride=1, dilation=1 supported"
    B, Cin, H, W = x_nchw.shape
    Cout, Cin2, KH, KW = w_oihw.shape
    assert Cin == Cin2
    Ho = H + 2 * padding - KH + 1
    Wo = W + 2 * padding - KW + 1
    Wp = W + 2 * padding

    Coutp = _round_up(Cout, 128)                # lane-dense output channels
    tcout = _pick_tile(Coutp, (256, 128))
    tho = _choose_tho(Ho, Wo)
    Ho_pad = _round_up(Ho, tho)
    nrb = Ho_pad // tho
    win_h = tho + KH - 1
    Hp_pad = Ho_pad + KH - 1                    # rows so every halo is in-bounds

    # Layout glue (NCHW -> padded NHWC).  TODO(synk): keep activations NHWC
    # across layers and fold the zero padding into the halo DMA (masked edge
    # rows) to avoid these extra HBM round trips per call.
    x_nhwc = jnp.transpose(x_nchw, (0, 2, 3, 1))
    xp = jnp.pad(x_nhwc, ((0, 0),
                          (padding, Hp_pad - H - padding),
                          (padding, padding), (0, 0)))
    wmat = jnp.transpose(w_oihw, (2, 3, 1, 0)).reshape(KH * KW, Cin, Cout)
    wmat = jnp.pad(wmat, ((0, 0), (0, 0), (0, Coutp - Cout)))
    bp = jnp.pad(b, (0, Coutp - Cout)).reshape(1, Coutp)

    grid = (B, Coutp // tcout, nrb)
    elt = jnp.dtype(x_nchw.dtype).itemsize
    cost = pl.CostEstimate(
        flops=2 * B * Ho_pad * Wo * KH * KW * Cin * Coutp,
        transcendentals=0,
        bytes_accessed=((Coutp // tcout) * B * Hp_pad * Wp * Cin * elt
                        + KH * KW * Cin * Coutp * elt
                        + B * Ho_pad * Wo * Coutp * elt))
    required = (2 * win_h * Wp * Cin * elt              # manual halo double buffer
                + 2 * KH * KW * Cin * tcout * elt       # weights (auto pipelined)
                + 2 * tcout * 4                         # bias
                + 2 * tho * Wo * tcout * elt            # output blocks
                + 2 * tho * Wo * tcout * 4              # f32 acc value / spills
                + (1 << 22))                            # relayout / compiler headroom

    out_nhwc = pl.pallas_call(
        functools.partial(_conv_kernel, KH=KH, KW=KW),
        out_shape=jax.ShapeDtypeStruct((B, Ho_pad, Wo, Coutp), x_nchw.dtype),
        grid=grid,
        in_specs=[
            pl.BlockSpec(memory_space=pl.ANY),          # stays in HBM, manual DMA
            pl.BlockSpec((KH * KW, Cin, tcout), lambda bi, j, r: (0, 0, j)),
            pl.BlockSpec((1, tcout), lambda bi, j, r: (0, j)),
        ],
        out_specs=pl.BlockSpec((None, tho, Wo, tcout),
                               lambda bi, j, r: (bi, r, 0, j)),
        scratch_shapes=[pltpu.VMEM((2, win_h, Wp, Cin), x_nchw.dtype),
                        pltpu.SemaphoreType.DMA((2,))],
        compiler_params=pltpu.CompilerParams(
            dimension_semantics=("parallel", "parallel", "arbitrary"),
            vmem_limit_bytes=_vmem_limit_bytes(required)),
        cost_estimate=cost,
    )(xp, wmat, bp)

    return jnp.transpose(out_nhwc[:, :Ho, :, :Cout], (0, 3, 1, 2))  # back to NCHW


# ----------------------------------------------------------------------------
# Demo / correctness checks
# ----------------------------------------------------------------------------
if __name__ == "__main__":
    key = jax.random.PRNGKey(0)
    ks = jax.random.split(key, 12)

    # ---- 2-D branch: SplitBias(nn.Linear(32, 16)) ----
    M, K, N = 8, 32, 16
    x2 = jax.random.normal(ks[0], (M, K), jnp.float32)
    w_lin = jax.random.normal(ks[1], (N, K), jnp.float32) / np.sqrt(K)
    b_lin = jax.random.normal(ks[2], (N,), jnp.float32) * 0.1
    y_lin = jax.block_until_ready(splitbias_linear(x2, w_lin, b_lin))
    y_lin_ref = jnp.dot(x2, w_lin.T, precision=lax.Precision.HIGHEST) + b_lin[None, :]
    assert np.allclose(np.asarray(y_lin), np.asarray(y_lin_ref),
                       atol=1e-3, rtol=1e-3), "linear mismatch"

    # ---- 2-D branch: awkward M and a multi-step K reduction ----
    M2, K2, N2 = 200, 384, 272
    x2b = jax.random.normal(ks[3], (M2, K2), jnp.float32)
    w2b = jax.random.normal(ks[4], (N2, K2), jnp.float32) / np.sqrt(K2)
    b2b = jax.random.normal(ks[5], (N2,), jnp.float32) * 0.1
    y2b = jax.block_until_ready(splitbias_linear(x2b, w2b, b2b))
    y2b_ref = jnp.dot(x2b, w2b.T, precision=lax.Precision.HIGHEST) + b2b[None, :]
    assert np.allclose(np.asarray(y2b), np.asarray(y2b_ref),
                       atol=1e-3, rtol=1e-3), "linear (large) mismatch"

    # bf16-MXU variant (f32 accumulation kept): compare against a bf16-input
    # reference so only the accumulation order differs.
    y2c = jax.block_until_ready(splitbias_linear(x2b, w2b, b2b, use_bf16_mxu=True))
    y2c_ref = (jnp.dot(x2b.astype(jnp.bfloat16), w2b.T.astype(jnp.bfloat16),
                       preferred_element_type=jnp.float32,
                       precision=lax.Precision.HIGHEST) + b2b[None, :])
    assert np.allclose(np.asarray(y2c), np.asarray(y2c_ref),
                       atol=5e-3, rtol=5e-3), "linear (bf16) mismatch"

    # ---- 4-D branch: SplitBias(nn.Conv2d(4, 8, 3, padding=1)), NCHW ----
    Bc, Ci, Hh, Ww, Co = 2, 4, 16, 16, 8
    x4 = jax.random.normal(ks[6], (Bc, Ci, Hh, Ww), jnp.float32)
    w_conv = jax.random.normal(ks[7], (Co, Ci, 3, 3), jnp.float32) / np.sqrt(Ci * 9)
    b_conv = jax.random.normal(ks[8], (Co,), jnp.float32) * 0.1
    y_conv = jax.block_until_ready(splitbias_conv2d(x4, w_conv, b_conv, padding=1))
    y_conv_ref = lax.conv_general_dilated(
        x4, w_conv, window_strides=(1, 1), padding=[(1, 1), (1, 1)],
        dimension_numbers=("NCHW", "OIHW", "NCHW"),
        precision=lax.Precision.HIGHEST) + b_conv.reshape(1, Co, 1, 1)
    assert np.allclose(np.asarray(y_conv), np.asarray(y_conv_ref),
                       atol=1e-3, rtol=1e-3), "conv mismatch"

    # ---- 4-D branch: multiple output-row blocks (exercises the manual halo
    #      DMA double-buffering across the row-sweep axis) ----
    Bc2, Ci2, H2, W2, Co2 = 2, 8, 32, 32, 16
    x4b = jax.random.normal(ks[9], (Bc2, Ci2, H2, W2), jnp.float32)
    w4b = jax.random.normal(ks[10], (Co2, Ci2, 3, 3), jnp.float32) / np.sqrt(Ci2 * 9)
    b4b = jax.random.normal(ks[11], (Co2,), jnp.float32) * 0.1
    y4b = jax.block_until_ready(splitbias_conv2d(x4b, w4b, b4b, padding=1))
    y4b_ref = lax.conv_general_dilated(
        x4b, w4b, window_strides=(1, 1), padding=[(1, 1), (1, 1)],
        dimension_numbers=("NCHW", "OIHW", "NCHW"),
        precision=lax.Precision.HIGHEST) + b4b.reshape(1, Co2, 1, 1)
    assert np.allclose(np.asarray(y4b), np.asarray(y4b_ref),
                       atol=1e-3, rtol=1e-3), "conv (row-tiled) mismatch"

    print("KERNEL_OK")
</pallas_src>

<mosaic_0001>
module attributes {stable_mosaic.version = 11 : i64} {
  func.func @_linear_kernel(%arg0: i32, %arg1: i32, %arg2: i32, %arg3: memref<16x128xf32, #tpu.memory_space<vmem>>, %arg4: memref<128x128xf32, #tpu.memory_space<vmem>>, %arg5: memref<1x128xf32, #tpu.memory_space<vmem>>, %arg6: memref<16x128xf32, #tpu.memory_space<vmem>>, %arg7: memref<16x128xf32, #tpu.memory_space<vmem>>) attributes {dimension_semantics = [#tpu.dimension_semantics<parallel>, #tpu.dimension_semantics<parallel>, #tpu.dimension_semantics<arbitrary>], iteration_bounds = array<i64: 1, 1, 1>, scalar_prefetch = 0 : i64, scratch_operands = 1 : i64, tpu.core_type = #tpu.core_type<tc>, window_params = [{transform_indices = @transform_0, window_bounds = array<i64: 16, 128>}, {transform_indices = @transform_1, window_bounds = array<i64: 128, 128>}, {transform_indices = @transform_2, window_bounds = array<i64: 1, 128>}, {transform_indices = @transform_3, window_bounds = array<i64: 16, 128>}]} {
    %c0_i32 = arith.constant 0 : i32
    %0 = arith.cmpi eq, %arg2, %c0_i32 : i32
    %1 = arith.extui %0 : i1 to i32
    %c0_i32_0 = arith.constant 0 : i32
    %2 = arith.cmpi ne, %1, %c0_i32_0 : i32
    scf.if %2 {
      %c0_10 = arith.constant 0 : index
      %c0_11 = arith.constant 0 : index
      %12 = vector.load %arg5[%c0_10, %c0_11] : memref<1x128xf32, #tpu.memory_space<vmem>>, vector<1x128xf32>
      %13 = vector.shape_cast %12 : vector<1x128xf32> to vector<1x128xf32>
      %14 = vector.broadcast %13 : vector<1x128xf32> to vector<16x128xf32>
      %c0_12 = arith.constant 0 : index
      %c0_13 = arith.constant 0 : index
      %15 = vector.load %arg7[%c0_12, %c0_13] : memref<16x128xf32, #tpu.memory_space<vmem>>, vector<16x128xf32>
      tpu.vector_store %arg7[%c0_12, %c0_13], %14 {strides = array<i32>} : memref<16x128xf32, #tpu.memory_space<vmem>>, vector<16x128xf32>,
    } else {
    }
    %c0 = arith.constant 0 : index
    %c0_1 = arith.constant 0 : index
    %3 = vector.load %arg7[%c0, %c0_1] : memref<16x128xf32, #tpu.memory_space<vmem>>, vector<16x128xf32>
    %c0_2 = arith.constant 0 : index
    %c0_3 = arith.constant 0 : index
    %4 = vector.load %arg3[%c0_2, %c0_3] : memref<16x128xf32, #tpu.memory_space<vmem>>, vector<16x128xf32>
    %c0_4 = arith.constant 0 : index
    %c0_5 = arith.constant 0 : index
    %5 = vector.load %arg4[%c0_4, %c0_5] : memref<128x128xf32, #tpu.memory_space<vmem>>, vector<128x128xf32>
    %cst = arith.constant dense<0.000000e+00> : vector<16x128xf32>
    %6 = tpu.matmul %4, %5, %cst {dimension_numbers = #tpu.dot_dimension_numbers<[1], [0], [0], [1], [0, 0, 1, 1], [], []>} : vector<16x128xf32>, vector<128x128xf32>, vector<16x128xf32> -> vector<16x128xf32>
    %7 = arith.addf %3, %6 : vector<16x128xf32>
    %c0_6 = arith.constant 0 : index
    %c0_7 = arith.constant 0 : index
    %8 = vector.load %arg7[%c0_6, %c0_7] : memref<16x128xf32, #tpu.memory_space<vmem>>, vector<16x128xf32>
    tpu.vector_store %arg7[%c0_6, %c0_7], %7 {strides = array<i32>} : memref<16x128xf32, #tpu.memory_space<vmem>>, vector<16x128xf32>,
    %c0_i32_8 = arith.constant 0 : i32
    %9 = arith.cmpi eq, %arg2, %c0_i32_8 : i32
    %10 = arith.extui %9 : i1 to i32
    %c0_i32_9 = arith.constant 0 : i32
    %11 = arith.cmpi ne, %10, %c0_i32_9 : i32
    scf.if %11 {
      %c0_10 = arith.constant 0 : index
      %c0_11 = arith.constant 0 : index
      %12 = vector.load %arg7[%c0_10, %c0_11] : memref<16x128xf32, #tpu.memory_space<vmem>>, vector<16x128xf32>
      %c0_12 = arith.constant 0 : index
      %c0_13 = arith.constant 0 : index
      %13 = vector.load %arg6[%c0_12, %c0_13] : memref<16x128xf32, #tpu.memory_space<vmem>>, vector<16x128xf32>
      tpu.vector_store %arg6[%c0_12, %c0_13], %12 {strides = array<i32>} : memref<16x128xf32, #tpu.memory_space<vmem>>, vector<16x128xf32>,
    } else {
    }
    return
  }
  func.func @transform_0(%arg0: i32, %arg1: i32, %arg2: i32) -> (i32, i32) {
    %c0_i32 = arith.constant 0 : i32
    return %arg0, %arg2 : i32, i32
  }
  func.func @transform_1(%arg0: i32, %arg1: i32, %arg2: i32) -> (i32, i32) {
    %c0_i32 = arith.constant 0 : i32
    return %arg2, %arg1 : i32, i32
  }
  func.func @transform_2(%arg0: i32, %arg1: i32, %arg2: i32) -> (i32, i32) {
    %c0_i32 = arith.constant 0 : i32
    %c0_i32_0 = arith.constant 0 : i32
    return %c0_i32, %arg1 : i32, i32
  }
  func.func @transform_3(%arg0: i32, %arg1: i32, %arg2: i32) -> (i32, i32) {
    %c0_i32 = arith.constant 0 : i32
    return %arg0, %arg1 : i32, i32
  }
}

</mosaic_0001>

<bundles_post_ra>
// kernel: tpu_custom_call.1
= control target key start
LH: loop header
LB: loop body
LE: loop exit
PB: predicated region body
PF: predicated region fallthrough
CT: control target
= control target key end

     0   :  { %8 = vsyncpa [#allocation4], 0  ;;  %s416_s0 = inlined_call_operand.hbm [shape: f32[16,128], index: 0, kind: input, shape index: {}]   ;;  %s417_s1 = inlined_call_operand.hbm [shape: f32[128,128], index: 1, kind: input, shape index: {}]   ;;  %s418_s2 = inlined_call_operand.vmem [shape: f32[1,128], index: 2, kind: input, shape index: {}]   ;;  %s419_s3 = inlined_call_operand.hbm [shape: f32[16,128], index: 3, kind: output, shape index: {}]  }
   0x1   :  { %9 = vsyncpa [#allocation7], 0 }
   0x2   :  { %10 = vsyncpa [#allocation5], 0  ;;  %s343_s12 = smov [#allocation3]   ;;  %s271_s16 = scalar_lea.hbm %s416_s0, 256 }
   0x3   :  { %s16_s13 = sshll.u32 %s343_s12, 4  ;;  %p272_p0 = scmp.ne.s32.totalorder %s416_s0, %s271_s16  ;;  %s17_s13 = int_to_ptr.vmem [resolvable:$true] %s16_s13 }
   0x4   :  { %p275_p1 = scmp.lt.u32.totalorder %s271_s16, %s416_s0 }
   0x6   :  { %p277_p2 = pnand %p275_p1, %p272_p0 }
   0x8   :  { %280 = shalt.err (!%p277_p2)
}
   0x9   :  { %s281_s21 = scalar_lea.vmem %s17_s13, 256  ;;  %p286_p4 = scmp.lt.s32.totalorder %s17_s13, %s17_s13 }
   0xa   :  { %p282_p3 = scmp.ne.s32.totalorder %s17_s13, %s281_s21  ;;  %p287_p5 = scmp.lt.s32.totalorder %s281_s21, %s281_s21 }
   0xc   :  { %p288_p6 = por %p287_p5, %p286_p4 }
   0xe   :  { %p289_p7 = pnand %p288_p6, %p282_p3 }
  0x10   :  { %292 = shalt.err (!%p289_p7)
}
  0x11   :  { %s344_s22 = smov 128   ;;  %s345_s23 = smov 8  }
  0x12   :  { %22 = dma.hbm_to_vmem [thread:$0]  %s416_s0, 256, %s17_s13, [#allocation4], %s344_s22, %s344_s22, %s345_s23  }
  0x13   :  { %s346_s26 = smov [#allocation6]   ;;  %s293_s30 = scalar_lea.hbm %s417_s1, 2048 }
  0x14   :  { %s28_s27 = sshll.u32 %s346_s26, 4  ;;  %p294_p8 = scmp.ne.s32.totalorder %s417_s1, %s293_s30  ;;  %s29_s27 = int_to_ptr.vmem [resolvable:$true] %s28_s27 }
  0x15   :  { %p297_p9 = scmp.lt.u32.totalorder %s293_s30, %s417_s1 }
  0x17   :  { %p299_p10 = pnand %p297_p9, %p294_p8 }
  0x19   :  { %302 = shalt.err (!%p299_p10)
}
  0x1a   :  { %s303_s8 = scalar_lea.vmem %s29_s27, 2048  ;;  %p308_p12 = scmp.lt.s32.totalorder %s29_s27, %s29_s27 }
  0x1b   :  { %p304_p11 = scmp.ne.s32.totalorder %s29_s27, %s303_s8  ;;  %p309_p13 = scmp.lt.s32.totalorder %s303_s8, %s303_s8 }
  0x1d   :  { %p310_p0 = por %p309_p13, %p308_p12 }
  0x1f   :  { %p311_p1 = pnand %p310_p0, %p304_p11 }
  0x21   :  { %314 = shalt.err (!%p311_p1)
}
  0x22   :  { %34 = dma.hbm_to_vmem [thread:$0]  %s417_s1, 2048, %s29_s27, [#allocation7], %s344_s22, %s344_s22, %s345_s23  }
  0x23   :  { %337 = dma.done.wait [#allocation4], 256  }
  0x24   :  { %338 = vsyncadd [#allocation4], 4294967040 }
  0x25   :  { %339 = dma.done.wait [#allocation7], 2048  }
  0x26   :  { %340 = vsyncadd [#allocation7], 4294965248  ;;  %v60_v0 = vld [vmem:[#allocation6] sm:$0xff]  ;;  %v61_v1 = vld [vmem:[#allocation6 + $0x8] sm:$0xff]  ;;  %s347_s11 = smov [#allocation8]  }
  0x27   :  { %v62_v2 = vld [vmem:[#allocation6 + $0x10] sm:$0xff]  ;;  %v234_v3 = vpack.c.bf16 %v61_v1, %v60_v0  ;;  %v63_v4 = vld [vmem:[#allocation6 + $0x18] sm:$0xff]  ;;  %v64_v6 = vld [vmem:[#allocation6 + $0x20] sm:$0xff]  ;;  %s167_s12 = sshll.u32 %s347_s11, 4  ;;  %s168_s12 = int_to_ptr.vmem [resolvable:$true] %s167_s12 }
  0x28   :  { %v238_v5 = vpack.c.bf16 %v63_v4, %v62_v2  ;;  %v65_v7 = vld [vmem:[#allocation6 + $0x28] sm:$0xff]  ;;  %v58_v9 = vld [vmem:[#allocation3] sm:$0xff]  ;;  %v67_v11 = vld [vmem:[#allocation6 + $0x38] sm:$0xff]  ;;  %s315_s13 = scalar_lea.vmem %s168_s12, 256  ;;  %p320_p3 = scmp.lt.s32.totalorder %s168_s12, %s168_s12 }
  0x29   :  { %235 = vmatprep.subr.bf16.mxu0 %v234_v3  ;;  %v242_v8 = vpack.c.bf16 %v65_v7, %v64_v6  ;;  %v66_v10 = vld [vmem:[#allocation6 + $0x30] sm:$0xff]  ;;  %231 = vmatprep.mubr.f32.mxu0 %v58_v9  ;;  %v68_v13 = vld [vmem:[#allocation6 + $0x40] sm:$0xff]  ;;  %v69_v14 = vld [vmem:[#allocation6 + $0x48] sm:$0xff]  ;;  %p316_p2 = scmp.ne.s32.totalorder %s168_s12, %s315_s13  ;;  %p321_p4 = scmp.lt.s32.totalorder %s315_s13, %s315_s13 }
  0x2a   :  { %237 = vmatpush3.bf16.msra.mxu0 %v234_v3  ;;  %v246_v12 = vpack.c.bf16 %v67_v11, %v66_v10  ;;  %v250_v15 = vpack.c.bf16 %v69_v14, %v68_v13  ;;  %v70_v16 = vld [vmem:[#allocation6 + $0x50] sm:$0xff]  ;;  %v71_v17 = vld [vmem:[#allocation6 + $0x58] sm:$0xff]  ;;  %v72_v19 = vld [vmem:[#allocation6 + $0x60] sm:$0xff] }
  0x2b   :  { %239 = vmatprep.subr.bf16.mxu0 %v238_v5  ;;  %v254_v18 = vpack.c.bf16 %v71_v17, %v70_v16  ;;  %v73_v20 = vld [vmem:[#allocation6 + $0x68] sm:$0xff]  ;;  %v74_v22 = vld [vmem:[#allocation6 + $0x70] sm:$0xff]  ;;  %v75_v23 = vld [vmem:[#allocation6 + $0x78] sm:$0xff]  ;;  %p322_p5 = por %p321_p4, %p320_p3 }
  0x2c   :  { %v258_v21 = vpack.c.bf16 %v73_v20, %v72_v19  ;;  %v262_v24 = vpack.c.bf16 %v75_v23, %v74_v22  ;;  %v59_v25 = vld [vmem:[#allocation3 + $0x8] sm:$0xff]  ;;  %v180_v26 = vld [vmem:[%s418_s2] ss:$0 sm:$0xff] }
  0x2d   :  { %p323_p6 = pnand %p322_p5, %p316_p2 }
  0x2e   :  { %241 = vmatpush3.bf16.msra.mxu0 %v238_v5 }
  0x2f   :  { %243 = vmatprep.subr.bf16.mxu0 %v242_v8 }
  0x32   :  { %245 = vmatpush3.bf16.msra.mxu0 %v242_v8 }
  0x33   :  { %247 = vmatprep.subr.bf16.mxu0 %v246_v12 }
  0x36   :  { %249 = vmatpush3.bf16.msra.mxu0 %v246_v12 }
  0x37   :  { %251 = vmatprep.subr.bf16.mxu0 %v250_v15 }
  0x3a   :  { %253 = vmatpush3.bf16.msra.mxu0 %v250_v15 }
  0x3b   :  { %255 = vmatprep.subr.bf16.mxu0 %v254_v18 }
  0x3e   :  { %257 = vmatpush3.bf16.msra.mxu0 %v254_v18 }
  0x3f   :  { %259 = vmatprep.subr.bf16.mxu0 %v258_v21 }
  0x42   :  { %261 = vmatpush3.bf16.msra.mxu0 %v258_v21 }
  0x43   :  { %263 = vmatprep.subr.bf16.mxu0 %v262_v24 }
  0x46   :  { %265 = vmatpush3.bf16.msra.mxu0 %v262_v24 }
  0x49   :  { %232 = vmatmul.mubr.f32.vlgmr.msra.gmra.mrb[0].mxu0 %v59_v25 }
 0x11c   :  { %v233_v27 = vpop.f32.mrb[0].mxu0 }
 0x11d   :  { %v152_v28 = vadd.f32 %v233_v27, %v180_v26  ;;  %v142_v29 = vpop.f32.mrb[1].mxu0 }
 0x11e   :  { %v151_v30 = vadd.f32 %v180_v26, %v142_v29 }
 0x11f   :  { %161 = vst [vmem:[#allocation8 + $0x8] sm:$0xff] %v152_v28 }
 0x120   :  { %160 = vst [vmem:[#allocation8] sm:$0xff] %v151_v30 }
 0x121   :  { %326 = shalt.err (!%p323_p6)
}
 0x122   :  { %s327_s2 = scalar_lea.hbm %s419_s3, 256 }
 0x123   :  { %p328_p7 = scmp.ne.s32.totalorder %s419_s3, %s327_s2  ;;  %p331_p8 = scmp.lt.u32.totalorder %s327_s2, %s419_s3 }
 0x125   :  { %p333_p9 = pnand %p331_p8, %p328_p7 }
 0x127   :  { %336 = shalt.err (!%p333_p9)
}
 0x128   :  { %173 = dma.vmem_to_hbm [thread:$0]  %s168_s12, 256, %s419_s3, [#allocation5], %s344_s22, %s344_s22, %s345_s23  }
 0x129   :  { %341 = dma.done.wait [#allocation5], 256  }
 0x12a   :  { %342 = vsyncadd [#allocation5], 4294967040 }
 0x12b   :  { %177 = vsyncpa [#allocation4], 1 }
 0x12c   :  { %178 = vsyncpa [#allocation7], 1 }
 0x12d   :  { %179 = vsyncpa [#allocation5], 1 }

</bundles_post_ra>
